<compile_context>
chip_gen: v5e
topology: v5e:2x2
jax: 0.10.0
libtpu: 0.0.40
codegen_flags: <defaults>
</compile_context>

<pallas_src>
import jax
import jax.numpy as jnp
from jax.experimental import pallas as pl
from jax.experimental.pallas import tpu as pltpu


def _query_loss_kernel(logits_ref, gt_ref, out_ref):
    # logits_ref: (TM, V) native dtype; gt_ref: (TM, 1) int32;
    # out_ref: (TM, 128) f32 -- lane 0 = loss, lane 1 = argmax, lane 2 = correct.
    x = logits_ref[...].astype(jnp.float32)                 # per-tile cast to f32
    gt = gt_ref[...]                                        # (TM, 1) int32
    tm, v = x.shape

    lane = jax.lax.broadcasted_iota(jnp.int32, (tm, v), 1)

    # ---- numerically stable log_softmax pieces (no full 'shifted' tile kept) ----
    m = jnp.max(x, axis=-1, keepdims=True)                  # (TM, 1)
    lse = jnp.log(jnp.sum(jnp.exp(x - m), axis=-1, keepdims=True))

    # gather logit at the ground-truth index via one-hot select
    gathered = jnp.sum(jnp.where(lane == gt, x, 0.0), axis=-1, keepdims=True)

    # loss = -log_softmax(x)[gt] = (lse + max) - logit[gt]
    loss = (lse + m) - gathered                             # (TM, 1)

    # ---- argmax over last dim (first index among ties, like torch.argmax) ----
    # NOTE: relies on exact float equality; assumes no NaN logits upstream.
    amax = jnp.min(jnp.where(x == m, lane, v), axis=-1, keepdims=True)  # (TM, 1)
    correct = (amax == gt).astype(jnp.float32)              # (TM, 1)

    # ---- pack into one lane-dense output slab ----
    lane128 = jax.lax.broadcasted_iota(jnp.int32, out_ref.shape, 1)
    out_ref[...] = jnp.where(
        lane128 == 0, loss,
        jnp.where(lane128 == 1, amax.astype(jnp.float32),
                  jnp.where(lane128 == 2, correct, 0.0)))


def _choose_tm(n, v):
    """Row-tile size: keep the f32 working tile around <= 8 MiB."""
    budget_elems = (8 * 1024 * 1024) // 4
    tm = max(8, budget_elems // max(v, 1))
    tm = min(tm, 1024)
    tm = (tm // 8) * 8
    if n <= tm:
        return n          # full-extent row block (legal even if n % 8 != 0)
    return tm


def query_loss_forward(logits, gt_idx, tm=None):
    """logits: [N, V] (f32 or bf16), gt_idx: [N] int.

    Returns (loss[N] f32, argmax[N] int32, correct[N] int32).
    """
    n, v = logits.shape
    if tm is None:
        tm = _choose_tm(n, v)
    grid = (pl.cdiv(n, tm),)

    gt2 = gt_idx.astype(jnp.int32).reshape(n, 1)
    itemsize = jnp.dtype(logits.dtype).itemsize

    cost = pl.CostEstimate(
        flops=6 * n * v,
        transcendentals=n * v,
        bytes_accessed=n * v * itemsize + n * 4 + n * 128 * 4,
    )

    packed = pl.pallas_call(
        _query_loss_kernel,
        grid=grid,
        in_specs=[
            pl.BlockSpec((tm, v), lambda i: (i, 0)),   # native-dtype logits tile
            pl.BlockSpec((tm, 1), lambda i: (i, 0)),   # gt indices
        ],
        out_specs=pl.BlockSpec((tm, 128), lambda i: (i, 0)),
        out_shape=jax.ShapeDtypeStruct((n, 128), jnp.float32),
        compiler_params=pltpu.CompilerParams(
            dimension_semantics=("parallel",),
            vmem_limit_bytes=48 * 1024 * 1024,
        ),
        cost_estimate=cost,
    )(logits, gt2)

    loss = packed[:, 0]
    amax = packed[:, 1].astype(jnp.int32)
    correct = packed[:, 2].astype(jnp.int32)
    return loss, amax, correct


def _reference(logits, gt_idx):
    x = logits.astype(jnp.float32)
    logp = jax.nn.log_softmax(x, axis=-1)
    n = x.shape[0]
    ref_loss = -logp[jnp.arange(n), gt_idx]
    ref_amax = jnp.argmax(x, axis=-1).astype(jnp.int32)
    ref_correct = (ref_amax == gt_idx).astype(jnp.int32)
    return ref_loss, ref_amax, ref_correct


if __name__ == "__main__":
    key = jax.random.PRNGKey(0)

    # ---- small demo matching the module's 'query' -> 'word' path ----
    vocab = ["zero", "one", "two", "three", "four", "five", "six", "seven"]
    word2idx = {w: i for i, w in enumerate(vocab)}
    idx2word = {i: w for w, i in word2idx.items()}

    N, V = 6, len(vocab)                       # 6 'query'-type answers in the batch
    k1, k2, k3 = jax.random.split(key, 3)
    logits = jax.random.normal(k1, (N, V), jnp.float32)     # answer logits per query
    gt_raw = jax.random.randint(k2, (N,), 0, V)
    gt_words = [vocab[int(i)] for i in gt_raw]              # feed_dict['answer'][i]
    gt_idx = jnp.array([word2idx[w] for w in gt_words], jnp.int32)

    loss, amax, correct = query_loss_forward(logits, gt_idx)
    jax.block_until_ready((loss, amax, correct))

    # Python-side glue reproducing the module's bookkeeping (monitors / outputs).
    # TODO(synk): per-query-type / relation-type monitor keys need the string
    # metadata from feed_dict; only aggregate 'acc/qa' / 'loss/query' formed here.
    monitors = {
        "loss/query": (float(jnp.mean(loss)), N),
        "acc/qa": (float(jnp.mean(correct.astype(jnp.float32))), N),
    }
    outputs = {
        "answer": [idx2word[int(a)] for a in amax],
        "gt": gt_words,
    }

    ref_loss, ref_amax, ref_correct = _reference(logits, gt_idx)
    assert jnp.allclose(loss, ref_loss, atol=1e-5), (loss, ref_loss)
    assert jnp.all(amax == ref_amax)
    assert jnp.all(correct == ref_correct)

    # ---- larger bf16 stress test: multi-tile grid, partial last row block,
    #      non-multiple-of-128 vocab (full-extent V block) ----
    N2, V2 = 200, 520
    k4, k5 = jax.random.split(k3)
    logits2 = jax.random.normal(k4, (N2, V2), jnp.float32).astype(jnp.bfloat16)
    gt2 = jax.random.randint(k5, (N2,), 0, V2).astype(jnp.int32)

    loss2, amax2, correct2 = query_loss_forward(logits2, gt2, tm=64)  # grid=(4,)
    jax.block_until_ready((loss2, amax2, correct2))

    ref_loss2, ref_amax2, ref_correct2 = _reference(logits2, gt2)
    assert jnp.allclose(loss2, ref_loss2, atol=1e-4, rtol=1e-4)
    assert jnp.all(amax2 == ref_amax2)
    assert jnp.all(correct2 == ref_correct2)

    print("KERNEL_OK")
</pallas_src>

<mosaic_0001>
module attributes {stable_mosaic.version = 11 : i64} {
  func.func @_query_loss_kernel(%arg0: i32, %arg1: memref<6x8xf32, #tpu.memory_space<vmem>>, %arg2: memref<6x1xi32, #tpu.memory_space<vmem>>, %arg3: memref<6x128xf32, #tpu.memory_space<vmem>>) attributes {dimension_semantics = [#tpu.dimension_semantics<parallel>], iteration_bounds = array<i64: 1>, scalar_prefetch = 0 : i64, scratch_operands = 0 : i64, tpu.core_type = #tpu.core_type<tc>, window_params = [{transform_indices = @transform_0, window_bounds = array<i64: 6, 8>}, {transform_indices = @transform_1, window_bounds = array<i64: 6, 1>}, {transform_indices = @transform_2, window_bounds = array<i64: 6, 128>}]} {
    %c0 = arith.constant 0 : index
    %c0_0 = arith.constant 0 : index
    %0 = vector.load %arg1[%c0, %c0_0] : memref<6x8xf32, #tpu.memory_space<vmem>>, vector<6x8xf32>
    %c0_1 = arith.constant 0 : index
    %c0_2 = arith.constant 0 : index
    %1 = vector.load %arg2[%c0_1, %c0_2] : memref<6x1xi32, #tpu.memory_space<vmem>>, vector<6x1xi32>
    %2 = tpu.iota {dimensions = array<i32: 1>} : vector<6x8xi32>
    %cst = arith.constant dense<0xFF800000> : vector<6xf32>
    %3 = vector.multi_reduction <maximumf>, %0, %cst [1] : vector<6x8xf32> to vector<6xf32>
    %4 = vector.shape_cast %3 : vector<6xf32> to vector<6x1xf32>
    %5 = vector.broadcast %4 : vector<6x1xf32> to vector<6x8xf32>
    %6 = arith.subf %0, %5 : vector<6x8xf32>
    %7 = math.exp %6 : vector<6x8xf32>
    %cst_3 = arith.constant dense<0.000000e+00> : vector<6xf32>
    %8 = vector.multi_reduction <add>, %7, %cst_3 [1] : vector<6x8xf32> to vector<6xf32>
    %9 = vector.shape_cast %8 : vector<6xf32> to vector<6x1xf32>
    %10 = math.log %9 : vector<6x1xf32>
    %11 = vector.broadcast %1 : vector<6x1xi32> to vector<6x8xi32>
    %12 = arith.cmpi eq, %2, %11 : vector<6x8xi32>
    %cst_4 = arith.constant 0.000000e+00 : f32
    %13 = vector.broadcast %cst_4 : f32 to vector<6x8xf32>
    %14 = arith.select %12, %0, %13 : vector<6x8xi1>, vector<6x8xf32>
    %cst_5 = arith.constant dense<0.000000e+00> : vector<6xf32>
    %15 = vector.multi_reduction <add>, %14, %cst_5 [1] : vector<6x8xf32> to vector<6xf32>
    %16 = vector.shape_cast %15 : vector<6xf32> to vector<6x1xf32>
    %17 = arith.addf %10, %4 : vector<6x1xf32>
    %18 = arith.subf %17, %16 : vector<6x1xf32>
    %19 = vector.broadcast %4 : vector<6x1xf32> to vector<6x8xf32>
    %20 = arith.cmpf oeq, %0, %19 : vector<6x8xf32>
    %c8_i32 = arith.constant 8 : i32
    %21 = vector.broadcast %c8_i32 : i32 to vector<6x8xi32>
    %22 = arith.select %20, %2, %21 : vector<6x8xi1>, vector<6x8xi32>
    %cst_6 = arith.constant dense<2147483647> : vector<6xi32>
    %23 = vector.multi_reduction <minsi>, %22, %cst_6 [1] : vector<6x8xi32> to vector<6xi32>
    %24 = vector.shape_cast %23 : vector<6xi32> to vector<6x1xi32>
    %25 = arith.cmpi eq, %24, %1 : vector<6x1xi32>
    %26 = arith.extui %25 : vector<6x1xi1> to vector<6x1xi32>
    %27 = arith.sitofp %26 : vector<6x1xi32> to vector<6x1xf32>
    %28 = tpu.iota {dimensions = array<i32: 1>} : vector<6x128xi32>
    %c0_i32 = arith.constant 0 : i32
    %29 = vector.broadcast %c0_i32 : i32 to vector<6x128xi32>
    %30 = arith.cmpi eq, %28, %29 : vector<6x128xi32>
    %c1_i32 = arith.constant 1 : i32
    %31 = vector.broadcast %c1_i32 : i32 to vector<6x128xi32>
    %32 = arith.cmpi eq, %28, %31 : vector<6x128xi32>
    %33 = arith.sitofp %24 : vector<6x1xi32> to vector<6x1xf32>
    %c2_i32 = arith.constant 2 : i32
    %34 = vector.broadcast %c2_i32 : i32 to vector<6x128xi32>
    %35 = arith.cmpi eq, %28, %34 : vector<6x128xi32>
    %cst_7 = arith.constant 0.000000e+00 : f32
    %36 = vector.shape_cast %27 : vector<6x1xf32> to vector<6x1xf32>
    %37 = vector.broadcast %36 : vector<6x1xf32> to vector<6x128xf32>
    %38 = vector.broadcast %cst_7 : f32 to vector<6x128xf32>
    %39 = arith.select %35, %37, %38 : vector<6x128xi1>, vector<6x128xf32>
    %40 = vector.shape_cast %33 : vector<6x1xf32> to vector<6x1xf32>
    %41 = vector.broadcast %40 : vector<6x1xf32> to vector<6x128xf32>
    %42 = arith.select %32, %41, %39 : vector<6x128xi1>, vector<6x128xf32>
    %43 = vector.shape_cast %18 : vector<6x1xf32> to vector<6x1xf32>
    %44 = vector.broadcast %43 : vector<6x1xf32> to vector<6x128xf32>
    %45 = arith.select %30, %44, %42 : vector<6x128xi1>, vector<6x128xf32>
    %c0_8 = arith.constant 0 : index
    %c0_9 = arith.constant 0 : index
    %46 = vector.load %arg3[%c0_8, %c0_9] : memref<6x128xf32, #tpu.memory_space<vmem>>, vector<6x128xf32>
    tpu.vector_store %arg3[%c0_8, %c0_9], %45 {strides = array<i32>} : memref<6x128xf32, #tpu.memory_space<vmem>>, vector<6x128xf32>,
    return
  }
  func.func @transform_0(%arg0: i32) -> (i32, i32) {
    %c0_i32 = arith.constant 0 : i32
    %c0_i32_0 = arith.constant 0 : i32
    return %arg0, %c0_i32 : i32, i32
  }
  func.func @transform_1(%arg0: i32) -> (i32, i32) {
    %c0_i32 = arith.constant 0 : i32
    %c0_i32_0 = arith.constant 0 : i32
    return %arg0, %c0_i32 : i32, i32
  }
  func.func @transform_2(%arg0: i32) -> (i32, i32) {
    %c0_i32 = arith.constant 0 : i32
    %c0_i32_0 = arith.constant 0 : i32
    return %arg0, %c0_i32 : i32, i32
  }
}

</mosaic_0001>

<bundles_post_ra>
// kernel: tpu_custom_call.1
= control target key start
LH: loop header
LB: loop body
LE: loop exit
PB: predicated region body
PF: predicated region fallthrough
CT: control target
= control target key end

     0   :  { %vm16_vm0 = vcmask 62464   ;;  %s154_s0 = inlined_call_operand.vmem [shape: f32[6,8], index: 0, kind: input, shape index: {}]   ;;  %s155_s1 = inlined_call_operand.vmem [shape: s32[6,1], index: 1, kind: input, shape index: {}]   ;;  %s156_s2 = inlined_call_operand.hbm [shape: f32[6,128], index: 2, kind: output, shape index: {}]  }
   0x1   :  { %v12_v0 = vld [vmem:[%s154_s0] sm:$0x3f] }
   0x2   :  { %7 = vsyncpa [#allocation3], 0  ;;  %v17_v1 = vsel %vm16_vm0, %v12_v0, -inf  ;;  %v14_v2 = vlaneseq  ;;  %v123_v13 = vmov 0   ;;  %v13_v18 = vld [vmem:[%s155_s1] sm:$0x3f] }
   0x3   :  { %18 = vmax.xlane.f32.xlu0 %v17_v1  ;;  %91 = vset.pattern.permute.xlu1 %v123_v13  ;;  %v124_v24 = vmov 0.0   ;;  %s125_s1 = smov [#allocation2]   ;;  %s78_s15 = sshll.u32 %s156_s2, 4  ;;  %s79_s15 = int_to_ptr.hbm [resolvable:$true] %s78_s15 }
   0x4   :  { %v15_v3 = vand.u32 127, %v14_v2  ;;  %92 = vset.pattern.permute.xlu0 %v123_v13  ;;  %s76_s12 = sshll.u32 %s125_s1, 4  ;;  %s77_s12 = int_to_ptr.vmem [resolvable:$true] %s76_s12 }
   0x6   :  { %vm61_vm5 = vcmp.eq.s32.totalorder %v15_v3, 2  ;;  %vm59_vm6 = vcmp.eq.s32.totalorder %v15_v3, 1  ;;  %vm58_vm7 = vcmp.eq.s32.totalorder %v15_v3, 0 }
  0x76   :  { %v19_v4 = vpop.xlane.xlu0 %18 }
  0x77   :  { %v20_v5 = vsub.f32 %v12_v0, %v19_v4  ;;  %vm38_vm1 = vcmp.eq.f32.partialorder %v12_v0, %v19_v4 }
  0x78   :  { %v39_v6 = vsel %vm38_vm1, %v15_v3, 8 }
  0x79   :  { %v21_v7 = vmul.f32 1.442695, %v20_v5  ;;  %v40_v8 = vsel %vm16_vm0, %v39_v6, 2147483647 }
  0x7a   :  { %v42_v9 = vshra.s32 %v40_v8, 16  ;;  %v41_v14 = vand.u32 65535, %v40_v8 }
  0x7b   :  { %93 = vpow2.f32 %v21_v7 }
  0x7c   :  { %v44_v10 = vcvt.s32.f32 %v42_v9  ;;  %v43_v16 = vcvt.s32.f32 %v41_v14 }
  0x7e   :  { %45 = vmin.xlane.f32.xlu0 %v44_v10 }
  0x81   :  { %v94_v11 = vpop.eup %93 }
  0x82   :  { %v23_v12 = vsel %vm16_vm0, %v94_v11, 0.0 }
  0x83   :  { %24 = vadd.xlane.f32.xlu2 %v23_v12 }
  0xf1   :  { %v46_v15 = vpop.xlane.xlu0 %45 }
  0xf2   :  { %vm47_vm2 = vcmp.eq.f32.partialorder %v44_v10, %v46_v15  ;;  %v52_v19 = vcvt.f32.s32 %v46_v15 }
  0xf3   :  { %v48_v17 = vsel %vm47_vm2, %v43_v16, inf }
  0xf4   :  { %49 = vmin.xlane.f32.xlu1 %v48_v17  ;;  %v53_v21 = vshll.u32 %v52_v19, 16 }
  0xf6   :  { %v25_v29 = vpop.xlane.xlu2 %24 }
  0xf7   :  { %95 = vlog2.f32 %v25_v29 }
  0xfd   :  { %v96_v30 = vpop.eup %95 }
  0xfe   :  { %v27_v31 = vmul.f32 0.6931472, %v96_v30 }
 0x100   :  { %v36_v34 = vadd.f32 %v27_v31, %v19_v4 }
 0x10d   :  { %29 = vperm.xlu1 %91, %v13_v18  }
 0x167   :  { %v50_v20 = vpop.xlane.xlu1 %49 }
 0x168   :  { %v51_v22 = vcvt.f32.s32 %v50_v20 }
 0x16a   :  { %v54_v23 = vadd.s32 %v53_v21, %v51_v22 }
 0x16c   :  { %vm55_vm3 = vcmp.eq.s32.totalorder %v54_v23, %v13_v18  ;;  %v60_v35 = vcvt.s32.f32 %v54_v23 }
 0x16d   :  { %v87_v25 = vsel %vm55_vm3, 1.0, %v124_v24 }
 0x16e   :  { %64 = vperm.xlu0 %92, %v87_v25  }
 0x17f   :  { %v30_v26 = vpop.permute.xlu1 %29 }
 0x180   :  { %vm31_vm4 = vcmp.eq.s32.totalorder %v15_v3, %v30_v26 }
 0x181   :  { %v32_v27 = vsel %vm31_vm4, %v12_v0, 0.0 }
 0x182   :  { %v33_v28 = vsel %vm16_vm0, %v32_v27, 0.0 }
 0x183   :  { %34 = vadd.xlane.f32.xlu2 %v33_v28 }
 0x1e0   :  { %v65_v32 = vpop.permute.xlu0 %64 }
 0x1e1   :  { %v67_v33 = vsel %vm61_vm5, %v65_v32, 0.0 }
 0x1e2   :  { %v68_v38 = vsel %vm59_vm6, %v60_v35, %v67_v33 }
 0x1f6   :  { %v35_v36 = vpop.xlane.xlu2 %34 }
 0x1f7   :  { %v37_v37 = vsub.f32 %v36_v34, %v35_v36 }
 0x1f9   :  { %v69_v39 = vsel %vm58_vm7, %v37_v37, %v68_v38 }
 0x1fa   :  { %70 = vst [vmem:[#allocation2] sm:$0x3f] %v69_v39 }
 0x1fb   :  { %81 = dma.vmem_to_hbm [thread:$0]  %s77_s12, 128, %s79_s15, [#allocation3]  }
 0x1fc   :  { %121 = dma.done.wait [#allocation3], 128  }
 0x1fd   :  { %122 = vsyncadd [#allocation3], 4294967168 }
 0x1fe   :  { %86 = vsyncpa [#allocation3], 1 }

</bundles_post_ra>
